<compile_context>
chip_gen: v7x
topology: tpu7x:2x2x1
jax: 0.10.0
libtpu: 0.0.40
codegen_flags: <defaults>
</compile_context>

<pallas_src>
import math

import jax
import jax.numpy as jnp
from jax.experimental import pallas as pl
from jax.experimental.pallas import tpu as pltpu


# ---------------------------------------------------------------------------
# Kernels
# ---------------------------------------------------------------------------

def _data_embedding_kernel_pe(x_ref, w_ref, pe_ref, o_ref):
    # x_ref : (bb, tile_l, 3*c_in)  halo'd input rows (halo built in the wrapper)
    # w_ref : (3*c_in, d_model)     fused conv taps, resident in VMEM
    # pe_ref: (tile_l, d_model)     float32 positional-embedding rows of this L tile
    # o_ref : (bb, tile_l, d_model) lane-dense output block (d_model on lanes)
    w = w_ref[...]
    pe = pe_ref[...]                                     # already float32
    for i in range(x_ref.shape[0]):                      # static, small batch block
        acc = jnp.dot(x_ref[i], w, preferred_element_type=jnp.float32)
        o_ref[i] = (acc + pe).astype(o_ref.dtype)


def _data_embedding_kernel_nopos(x_ref, w_ref, o_ref):
    w = w_ref[...]
    for i in range(x_ref.shape[0]):
        acc = jnp.dot(x_ref[i], w, preferred_element_type=jnp.float32)
        o_ref[i] = acc.astype(o_ref.dtype)


# ---------------------------------------------------------------------------
# Helpers
# ---------------------------------------------------------------------------

def _positional_embedding(L, d_model):
    """float32 PE, matching the PyTorch buffer: even cols sin, odd cols cos."""
    pos = jnp.arange(L, dtype=jnp.float32)[:, None]                      # (L, 1)
    div = jnp.exp(jnp.arange(0, d_model, 2, dtype=jnp.float32)
                  * (-math.log(10000.0) / d_model))                      # (d_model//2,)
    pe = jnp.stack([jnp.sin(pos * div), jnp.cos(pos * div)], axis=-1)    # (L, d/2, 2)
    return pe.reshape(L, d_model)                                        # float32


def _round_up(x, m):
    return ((x + m - 1) // m) * m


def _step_vmem_bytes(tile_l, bb, kdim, d_model, itemsize, use_pos):
    """Conservative per-grid-step VMEM estimate: double-buffered x/out/pe blocks,
    f32 accumulator temporaries and the resident fused weights (128-lane padding)."""
    rows = _round_up(tile_l, 8)
    x_b = 2 * bb * rows * _round_up(kdim, 128) * itemsize
    out_b = 2 * bb * rows * _round_up(d_model, 128) * itemsize
    acc_b = 2 * bb * rows * _round_up(d_model, 128) * 4
    pe_b = (2 * rows * _round_up(d_model, 128) * 4) if use_pos else 0
    w_b = 2 * _round_up(kdim, 8) * _round_up(d_model, 128) * itemsize
    return x_b + out_b + acc_b + pe_b + w_b


def _vmem_budget_and_cap():
    """Generation-aware budget: large tiles on 128 MiB parts (v5e/v6e),
    conservative on v7x's 64 MiB VMEM."""
    try:
        vmem = pltpu.get_tpu_info().vmem_capacity_bytes
    except Exception:
        vmem = 64 * 1024 * 1024
    if vmem >= 96 * 1024 * 1024:          # v5e / v6e (128 MiB)
        return 64 * 1024 * 1024, 2048
    return 32 * 1024 * 1024, 1024         # v7x (64 MiB)


def _pick_tile_l(L, kdim, d_model, itemsize, use_pos, budget, cap):
    # Row alignment: 8 for f32, 16 for bf16, 32 for 8-bit -> unmasked stores.
    step = {4: 8, 2: 16, 1: 32}.get(itemsize, 8)
    best = None
    t = step
    hi = min(L, cap)
    while t <= hi:
        if L % t == 0 and _step_vmem_bytes(t, 1, kdim, d_model, itemsize, use_pos) <= budget:
            best = t
        t += step
    return best if best is not None else L   # full-extent block is always legal


def _pick_batch_block(B, tile_l, kdim, d_model, itemsize, use_pos, budget):
    """Fold batch into the block when the per-step output tile is small, to amortize
    the ~0.35 us/step grid overhead."""
    out_tile = tile_l * d_model * itemsize
    if B == 1 or out_tile >= 256 * 1024:
        return 1
    bb = 1
    for cand in range(2, B + 1):
        if B % cand != 0:
            continue
        if cand * out_tile > 4 * 1024 * 1024:
            break
        if _step_vmem_bytes(tile_l, cand, kdim, d_model, itemsize, use_pos) <= budget:
            bb = cand
    return bb


# ---------------------------------------------------------------------------
# Public wrapper
# ---------------------------------------------------------------------------

def data_embedding(x, conv_weight, *, use_pos=True, tile_l=None, batch_block=None):
    """Pallas TPU forward of DataEmbedding (dropout p=0.0 -> identity, omitted).

    x           : (B, L, c_in)           -- input layout of the PyTorch forward
    conv_weight : (d_model, c_in, 3)     -- PyTorch Conv1d weight layout
    returns     : (B, L, d_model), dtype = x.dtype
    """
    B, L, c_in = x.shape
    d_model, c_in_w, ksize = conv_weight.shape
    if c_in_w != c_in or ksize != 3:
        raise ValueError("conv_weight must have shape (d_model, c_in, 3)")
    if use_pos and d_model % 2 != 0:
        raise ValueError("d_model must be even when use_pos=True")

    itemsize = jnp.dtype(x.dtype).itemsize
    kdim = 3 * c_in

    # Circular halo built in the wrapper: x_halo[b, t] = [x[t-1], x[t], x[t+1]] (mod L).
    x_halo = jnp.concatenate(
        [jnp.roll(x, 1, axis=1), x, jnp.roll(x, -1, axis=1)], axis=-1)    # (B, L, 3*c_in)

    # Fused taps: tap k multiplies x[t - 1 + k] (Conv1d = cross-correlation, no flip),
    # matching x_halo's [t-1, t, t+1] concatenation order along the last dim.
    w = jnp.transpose(conv_weight, (2, 1, 0)).reshape(kdim, d_model).astype(x.dtype)

    budget, cap = _vmem_budget_and_cap()
    if tile_l is None:
        tile_l = _pick_tile_l(L, kdim, d_model, itemsize, use_pos, budget, cap)
    if L % tile_l != 0:
        raise ValueError(f"tile_l={tile_l} must divide L={L}")
    if batch_block is None:
        batch_block = _pick_batch_block(B, tile_l, kdim, d_model, itemsize, use_pos, budget)
    if B % batch_block != 0:
        raise ValueError(f"batch_block={batch_block} must divide B={B}")
    bb = batch_block
    n_l, n_b = L // tile_l, B // bb

    vmem_limit = int(max(budget,
                         _step_vmem_bytes(tile_l, bb, kdim, d_model, itemsize, use_pos)
                         + 4 * 1024 * 1024))

    # Grid: L tiles outer, batch blocks inner -> the pe block is reused across the inner
    # batch loop. Both axes are reduction-free.
    grid = (n_l, n_b)

    x_spec = pl.BlockSpec((bb, tile_l, kdim), lambda l, b: (b, l, 0))
    w_spec = pl.BlockSpec((kdim, d_model), lambda l, b: (0, 0))            # resident
    out_spec = pl.BlockSpec((bb, tile_l, d_model), lambda l, b: (b, l, 0))

    compiler_params = pltpu.CompilerParams(
        dimension_semantics=("parallel", "parallel"),
        vmem_limit_bytes=vmem_limit,
    )

    if use_pos:
        pe = _positional_embedding(L, d_model)                             # float32
        pe_spec = pl.BlockSpec((tile_l, d_model), lambda l, b: (l, 0))
        return pl.pallas_call(
            _data_embedding_kernel_pe,
            out_shape=jax.ShapeDtypeStruct((B, L, d_model), x.dtype),
            grid_spec=pltpu.PrefetchScalarGridSpec(
                num_scalar_prefetch=0,
                grid=grid,
                in_specs=[x_spec, w_spec, pe_spec],
                out_specs=out_spec,
            ),
            compiler_params=compiler_params,
        )(x_halo, w, pe)

    return pl.pallas_call(
        _data_embedding_kernel_nopos,
        out_shape=jax.ShapeDtypeStruct((B, L, d_model), x.dtype),
        grid_spec=pltpu.PrefetchScalarGridSpec(
            num_scalar_prefetch=0,
            grid=grid,
            in_specs=[x_spec, w_spec],
            out_specs=out_spec,
        ),
        compiler_params=compiler_params,
    )(x_halo, w)


# ---------------------------------------------------------------------------
# Pure-JAX reference (matches the PyTorch module's forward)
# ---------------------------------------------------------------------------

def _data_embedding_reference(x, conv_weight, use_pos=True):
    B, L, c_in = x.shape
    d_model = conv_weight.shape[0]
    x_prev = jnp.roll(x, 1, axis=1)    # x[(t-1) % L]
    x_next = jnp.roll(x, -1, axis=1)   # x[(t+1) % L]
    y = (jnp.einsum("blc,dc->bld", x_prev, conv_weight[:, :, 0])
         + jnp.einsum("blc,dc->bld", x, conv_weight[:, :, 1])
         + jnp.einsum("blc,dc->bld", x_next, conv_weight[:, :, 2]))
    if use_pos:
        y = y + _positional_embedding(L, d_model)[None]
    return y.astype(x.dtype)


if __name__ == "__main__":
    key = jax.random.PRNGKey(0)
    kx, kw = jax.random.split(key)

    B, L, c_in, d_model = 2, 64, 7, 128
    x = jax.random.normal(kx, (B, L, c_in), dtype=jnp.float32)
    # Kaiming-normal-style init (fan_in = c_in * kernel_size), like the PyTorch module.
    fan_in = c_in * 3
    conv_weight = (jax.random.normal(kw, (d_model, c_in, 3), dtype=jnp.float32)
                   * math.sqrt(2.0 / fan_in))

    ref_pos = _data_embedding_reference(x, conv_weight, use_pos=True)
    ref_nopos = _data_embedding_reference(x, conv_weight, use_pos=False)

    out_auto = jax.block_until_ready(data_embedding(x, conv_weight))                 # heuristic tiling (+batch fold)
    out_tiled = jax.block_until_ready(data_embedding(x, conv_weight, tile_l=32))     # multi L-tile path
    out_nopos = jax.block_until_ready(data_embedding(x, conv_weight, use_pos=False)) # no-pe kernel

    ok = True
    for got, want in [(out_auto, ref_pos), (out_tiled, ref_pos), (out_nopos, ref_nopos)]:
        if got.shape != (B, L, d_model):
            ok = False
            break
        err = float(jnp.max(jnp.abs(got.astype(jnp.float32) - want.astype(jnp.float32))))
        # Tolerance absorbs MXU default-precision rounding; real bugs (tap order, wrap,
        # pe offset) produce O(1) errors and still trip this check.
        if not (err < 3e-2):
            ok = False
            break
    if not ok:
        raise AssertionError("mismatch vs reference")
    print("KERNEL_OK")
</pallas_src>

<mosaic_0001>
module attributes {stable_mosaic.version = 11 : i64} {
  func.func @_data_embedding_kernel_pe(%arg0: i32, %arg1: i32, %arg2: memref<2x64x21xf32, #tpu.memory_space<vmem>>, %arg3: memref<21x128xf32, #tpu.memory_space<vmem>>, %arg4: memref<64x128xf32, #tpu.memory_space<vmem>>, %arg5: memref<2x64x128xf32, #tpu.memory_space<vmem>>) attributes {dimension_semantics = [#tpu.dimension_semantics<parallel>, #tpu.dimension_semantics<parallel>], iteration_bounds = array<i64: 1, 1>, scalar_prefetch = 0 : i64, scratch_operands = 0 : i64, tpu.core_type = #tpu.core_type<tc>, window_params = [{transform_indices = @transform_0, window_bounds = array<i64: 2, 64, 21>}, {pipeline_mode = #tpu.pipeline_mode<synchronous>, transform_indices = @transform_1, window_bounds = array<i64: 21, 128>}, {transform_indices = @transform_2, window_bounds = array<i64: 64, 128>}, {transform_indices = @transform_3, window_bounds = array<i64: 2, 64, 128>}]} {
    %c0 = arith.constant 0 : index
    %c0_0 = arith.constant 0 : index
    %0 = vector.load %arg3[%c0, %c0_0] : memref<21x128xf32, #tpu.memory_space<vmem>>, vector<21x128xf32>
    %c0_1 = arith.constant 0 : index
    %c0_2 = arith.constant 0 : index
    %1 = vector.load %arg4[%c0_1, %c0_2] : memref<64x128xf32, #tpu.memory_space<vmem>>, vector<64x128xf32>
    %c0_3 = arith.constant 0 : index
    %c0_4 = arith.constant 0 : index
    %c0_5 = arith.constant 0 : index
    %2 = vector.load %arg2[%c0_3, %c0_4, %c0_5] : memref<2x64x21xf32, #tpu.memory_space<vmem>>, vector<1x64x21xf32>
    %3 = vector.shape_cast %2 : vector<1x64x21xf32> to vector<64x21xf32>
    %cst = arith.constant dense<0.000000e+00> : vector<64x128xf32>
    %4 = tpu.matmul %3, %0, %cst {dimension_numbers = #tpu.dot_dimension_numbers<[1], [0], [0], [1], [0, 0, 1, 1], [], []>} : vector<64x21xf32>, vector<21x128xf32>, vector<64x128xf32> -> vector<64x128xf32>
    %5 = arith.addf %4, %1 : vector<64x128xf32>
    %c0_6 = arith.constant 0 : index
    %c0_7 = arith.constant 0 : index
    %c0_8 = arith.constant 0 : index
    %6 = vector.load %arg5[%c0_6, %c0_7, %c0_8] : memref<2x64x128xf32, #tpu.memory_space<vmem>>, vector<1x64x128xf32>
    %7 = vector.shape_cast %6 : vector<1x64x128xf32> to vector<64x128xf32>
    %8 = vector.shape_cast %5 : vector<64x128xf32> to vector<1x64x128xf32>
    tpu.vector_store %arg5[%c0_6, %c0_7, %c0_8], %8 {strides = array<i32>} : memref<2x64x128xf32, #tpu.memory_space<vmem>>, vector<1x64x128xf32>,
    %c1 = arith.constant 1 : index
    %c0_9 = arith.constant 0 : index
    %c0_10 = arith.constant 0 : index
    %9 = vector.load %arg2[%c1, %c0_9, %c0_10] : memref<2x64x21xf32, #tpu.memory_space<vmem>>, vector<1x64x21xf32>
    %10 = vector.shape_cast %9 : vector<1x64x21xf32> to vector<64x21xf32>
    %cst_11 = arith.constant dense<0.000000e+00> : vector<64x128xf32>
    %11 = tpu.matmul %10, %0, %cst_11 {dimension_numbers = #tpu.dot_dimension_numbers<[1], [0], [0], [1], [0, 0, 1, 1], [], []>} : vector<64x21xf32>, vector<21x128xf32>, vector<64x128xf32> -> vector<64x128xf32>
    %12 = arith.addf %11, %1 : vector<64x128xf32>
    %c1_12 = arith.constant 1 : index
    %c0_13 = arith.constant 0 : index
    %c0_14 = arith.constant 0 : index
    %13 = vector.load %arg5[%c1_12, %c0_13, %c0_14] : memref<2x64x128xf32, #tpu.memory_space<vmem>>, vector<1x64x128xf32>
    %14 = vector.shape_cast %13 : vector<1x64x128xf32> to vector<64x128xf32>
    %15 = vector.shape_cast %12 : vector<64x128xf32> to vector<1x64x128xf32>
    tpu.vector_store %arg5[%c1_12, %c0_13, %c0_14], %15 {strides = array<i32>} : memref<2x64x128xf32, #tpu.memory_space<vmem>>, vector<1x64x128xf32>,
    return
  }
  func.func @transform_0(%arg0: i32, %arg1: i32) -> (i32, i32, i32) {
    %c0_i32 = arith.constant 0 : i32
    %c0_i32_0 = arith.constant 0 : i32
    return %arg1, %arg0, %c0_i32 : i32, i32, i32
  }
  func.func @transform_1(%arg0: i32, %arg1: i32) -> (i32, i32) {
    %c0_i32 = arith.constant 0 : i32
    %c0_i32_0 = arith.constant 0 : i32
    %c0_i32_1 = arith.constant 0 : i32
    return %c0_i32, %c0_i32_0 : i32, i32
  }
  func.func @transform_2(%arg0: i32, %arg1: i32) -> (i32, i32) {
    %c0_i32 = arith.constant 0 : i32
    %c0_i32_0 = arith.constant 0 : i32
    return %arg0, %c0_i32 : i32, i32
  }
  func.func @transform_3(%arg0: i32, %arg1: i32) -> (i32, i32, i32) {
    %c0_i32 = arith.constant 0 : i32
    %c0_i32_0 = arith.constant 0 : i32
    return %arg1, %arg0, %c0_i32 : i32, i32, i32
  }
}

</mosaic_0001>

<bundles_post_ra>
// kernel: tpu_custom_call.1
= control target key start
LH: loop header
LB: loop body
LE: loop exit
PB: predicated region body
PF: predicated region fallthrough
CT: control target
= control target key end

     0   :  { %vm34_vm0 = vcmask 171008   ;;  %vm59_vm1 = vcmask 1044480   ;;  %s590_s0 = inlined_call_operand.vmem [shape: f32[2,64,21], index: 0, kind: input, shape index: {}]   ;;  %s591_s1 = inlined_call_operand.vmem [shape: f32[21,128], index: 1, kind: input, shape index: {}]   ;;  %s592_s2 = inlined_call_operand.vmem [shape: f32[64,128], index: 2, kind: input, shape index: {}]   ;;  %s593_s3 = inlined_call_operand.hbm [shape: f32[2,64,128], index: 3, kind: output, shape index: {}]  }
   0x1   :  { %v15_v0 = vld [vmem:[%s591_s1] sm:$0xff]  ;;  %v16_v1 = vld [vmem:[%s591_s1 + $0x8] sm:$0xff]  ;;  %v17_v5 = vld [vmem:[%s591_s1 + $0x10] sm:$0x1f] }
   0x2   :  { %v423_v2 = vpack.c.bf16 %v16_v1, %v15_v0  ;;  %v26_v3 = vld [vmem:[%s590_s0] sm:$0xff]  ;;  %v27_v6 = vld [vmem:[%s590_s0 + $0x8] sm:$0xff] }
   0x3   :  { %v348_v4 = vld [vmem:[%s590_s0 + $0x40] sm:$0xff]  ;;  %393 = vmatprep.mubr.msk.f32.mxu0 %vm34_vm0, %v26_v3  ;;  %v349_v7 = vld [vmem:[%s590_s0 + $0x48] sm:$0xff] }
   0x4   :  { %411 = vmatprep.mubr.msk.f32.mxu1 %vm34_vm0, %v348_v4  ;;  %424 = vmatprep.subr.bf16.mxu0 %v423_v2 }
   0x5   :  { %428 = vmatprep.subr.bf16.mxu1 %v423_v2  ;;  %426 = vmatpush3.bf16.msra.mxu0 %v423_v2 }
   0x6   :  { %430 = vmatpush3.bf16.msra.mxu1 %v423_v2  ;;  %391 = vmatprep.subr.msk.mxu0 %vm59_vm1, %v17_v5 }
   0x7   :  { %409 = vmatprep.subr.msk.mxu1 %vm59_vm1, %v17_v5 }
   0x8   :  { %8 = vsyncpa [#allocation3], 0  ;;  %v28_v8 = vld [vmem:[%s590_s0 + $0x10] sm:$0xff]  ;;  %v29_v10 = vld [vmem:[%s590_s0 + $0x18] sm:$0xff]  ;;  %s458_s7 = smov [#allocation2]  }
   0x9   :  { %v350_v9 = vld [vmem:[%s590_s0 + $0x50] sm:$0xff]  ;;  %392 = vmatpush3.msk.msra.mxu0 %vm59_vm1, %v17_v5  ;;  %v351_v11 = vld [vmem:[%s590_s0 + $0x58] sm:$0xff]  ;;  %v30_v12 = vld [vmem:[%s590_s0 + $0x20] sm:$0xff]  ;;  %s328_s8 = sshll.u32 %s458_s7, 4  ;;  %s329_s8 = int_to_ptr.vmem [resolvable:$true] %s328_s8 }
   0xa   :  { %410 = vmatpush3.msk.msra.mxu1 %vm59_vm1, %v17_v5  ;;  %394 = vmatmul.mubr.msk.f32.vlgmr.msra.gmra.mrb[0].mxu0 %vm34_vm0, %v27_v6  ;;  %v352_v13 = vld [vmem:[%s590_s0 + $0x60] sm:$0xff]  ;;  %v31_v14 = vld [vmem:[%s590_s0 + $0x28] sm:$0xff]  ;;  %v32_v16 = vld [vmem:[%s590_s0 + $0x30] sm:$0xff]  ;;  %s434_s11 = scalar_lea.vmem %s329_s8, 2048  ;;  %p439_p1 = scmp.lt.s32.totalorder %s329_s8, %s329_s8 }
   0xb   :  { %412 = vmatmul.mubr.msk.f32.vlgmr.msra.gmra.mrb[0].mxu1 %vm34_vm0, %v349_v7  ;;  %396 = vmatprep.mubr.msk.f32.mxu0 %vm34_vm0, %v28_v8  ;;  %v353_v15 = vld [vmem:[%s590_s0 + $0x68] sm:$0xff]  ;;  %v354_v17 = vld [vmem:[%s590_s0 + $0x70] sm:$0xff]  ;;  %v33_v18 = vld [vmem:[%s590_s0 + $0x38] sm:$0xff]  ;;  %p435_p0 = scmp.ne.s32.totalorder %s329_s8, %s434_s11  ;;  %p440_p2 = scmp.lt.s32.totalorder %s434_s11, %s434_s11 }
   0xc   :  { %414 = vmatprep.mubr.msk.f32.mxu1 %vm34_vm0, %v350_v9  ;;  %v355_v19 = vld [vmem:[%s590_s0 + $0x78] sm:$0xff]  ;;  %v19_v20 = vld [vmem:[%s592_s2 + $0x8] sm:$0xff]  ;;  %v18_v21 = vld [vmem:[%s592_s2] sm:$0xff] }
   0xd   :  { %v21_v30 = vld [vmem:[%s592_s2 + $0x18] sm:$0xff]  ;;  %v20_v31 = vld [vmem:[%s592_s2 + $0x10] sm:$0xff]  ;;  %v23_v40 = vld [vmem:[%s592_s2 + $0x28] sm:$0xff]  ;;  %p441_p3 = por %p440_p2, %p439_p1 }
   0xe   :  { %397 = vmatmul.mubr.msk.f32.gmra.mrb[2].mxu0 %vm34_vm0, %v29_v10  ;;  %v22_v41 = vld [vmem:[%s592_s2 + $0x20] sm:$0xff]  ;;  %v25_v50 = vld [vmem:[%s592_s2 + $0x38] sm:$0xff]  ;;  %v24_v51 = vld [vmem:[%s592_s2 + $0x30] sm:$0xff] }
   0xf   :  { %415 = vmatmul.mubr.msk.f32.gmra.mrb[2].mxu1 %vm34_vm0, %v351_v11  ;;  %399 = vmatprep.mubr.msk.f32.mxu0 %vm34_vm0, %v30_v12  ;;  %p442_p4 = pnand %p441_p3, %p435_p0 }
  0x10   :  { %417 = vmatprep.mubr.msk.f32.mxu1 %vm34_vm0, %v352_v13 }
  0x12   :  { %400 = vmatmul.mubr.msk.f32.gmra.mrb[4].mxu0 %vm34_vm0, %v31_v14 }
  0x13   :  { %418 = vmatmul.mubr.msk.f32.gmra.mrb[4].mxu1 %vm34_vm0, %v353_v15  ;;  %402 = vmatprep.mubr.msk.f32.mxu0 %vm34_vm0, %v32_v16 }
  0x14   :  { %420 = vmatprep.mubr.msk.f32.mxu1 %vm34_vm0, %v354_v17 }
  0x16   :  { %403 = vmatmul.mubr.msk.f32.gmra.mrb[6].mxu0 %vm34_vm0, %v33_v18 }
  0x17   :  { %421 = vmatmul.mubr.msk.f32.gmra.mrb[6].mxu1 %vm34_vm0, %v355_v19 }
  0xdd   :  { %v395_v22 = vpop.f32.mrb[0].mxu0 }
  0xde   :  { %v413_v23 = vpop.f32.mrb[0].mxu1  ;;  %v135_v24 = vadd.f32 %v395_v22, %v19_v20  ;;  %v129_v26 = vpop.f32.mrb[1].mxu0 }
  0xdf   :  { %v281_v25 = vadd.f32 %v413_v23, %v19_v20  ;;  %v275_v27 = vpop.f32.mrb[1].mxu1  ;;  %v130_v28 = vadd.f32 %v129_v26, %v18_v21 }
  0xe0   :  { %v276_v29 = vadd.f32 %v275_v27, %v18_v21  ;;  %169 = vst [vmem:[#allocation2 + $0x8] sm:$0xff] %v135_v24 }
  0xe1   :  { %316 = vst [vmem:[#allocation2 + $0x48] sm:$0xff] %v281_v25  ;;  %168 = vst [vmem:[#allocation2] sm:$0xff] %v130_v28  ;;  %v398_v32 = vpop.f32.mrb[2].mxu0 }
  0xe2   :  { %315 = vst [vmem:[#allocation2 + $0x40] sm:$0xff] %v276_v29  ;;  %v416_v33 = vpop.f32.mrb[2].mxu1  ;;  %v145_v34 = vadd.f32 %v398_v32, %v21_v30  ;;  %v139_v36 = vpop.f32.mrb[3].mxu0 }
  0xe3   :  { %v291_v35 = vadd.f32 %v416_v33, %v21_v30  ;;  %v285_v37 = vpop.f32.mrb[3].mxu1  ;;  %v140_v38 = vadd.f32 %v139_v36, %v20_v31 }
  0xe4   :  { %v286_v39 = vadd.f32 %v285_v37, %v20_v31  ;;  %171 = vst [vmem:[#allocation2 + $0x18] sm:$0xff] %v145_v34 }
  0xe5   :  { %318 = vst [vmem:[#allocation2 + $0x58] sm:$0xff] %v291_v35  ;;  %170 = vst [vmem:[#allocation2 + $0x10] sm:$0xff] %v140_v38  ;;  %v401_v42 = vpop.f32.mrb[4].mxu0 }
  0xe6   :  { %317 = vst [vmem:[#allocation2 + $0x50] sm:$0xff] %v286_v39  ;;  %v419_v43 = vpop.f32.mrb[4].mxu1  ;;  %v155_v44 = vadd.f32 %v401_v42, %v23_v40  ;;  %v149_v46 = vpop.f32.mrb[5].mxu0 }
  0xe7   :  { %v301_v45 = vadd.f32 %v419_v43, %v23_v40  ;;  %v295_v47 = vpop.f32.mrb[5].mxu1  ;;  %v150_v48 = vadd.f32 %v149_v46, %v22_v41 }
  0xe8   :  { %v296_v49 = vadd.f32 %v295_v47, %v22_v41  ;;  %173 = vst [vmem:[#allocation2 + $0x28] sm:$0xff] %v155_v44 }
  0xe9   :  { %320 = vst [vmem:[#allocation2 + $0x68] sm:$0xff] %v301_v45  ;;  %172 = vst [vmem:[#allocation2 + $0x20] sm:$0xff] %v150_v48  ;;  %v404_v52 = vpop.f32.mrb[6].mxu0 }
  0xea   :  { %319 = vst [vmem:[#allocation2 + $0x60] sm:$0xff] %v296_v49  ;;  %v422_v53 = vpop.f32.mrb[6].mxu1  ;;  %v165_v54 = vadd.f32 %v404_v52, %v25_v50  ;;  %v159_v56 = vpop.f32.mrb[7].mxu0 }
  0xeb   :  { %v311_v55 = vadd.f32 %v422_v53, %v25_v50  ;;  %v305_v57 = vpop.f32.mrb[7].mxu1  ;;  %v160_v58 = vadd.f32 %v159_v56, %v24_v51 }
  0xec   :  { %v306_v59 = vadd.f32 %v305_v57, %v24_v51  ;;  %175 = vst [vmem:[#allocation2 + $0x38] sm:$0xff] %v165_v54 }
  0xed   :  { %322 = vst [vmem:[#allocation2 + $0x78] sm:$0xff] %v311_v55  ;;  %174 = vst [vmem:[#allocation2 + $0x30] sm:$0xff] %v160_v58 }
  0xee   :  { %321 = vst [vmem:[#allocation2 + $0x70] sm:$0xff] %v306_v59 }
  0xef   :  { %445 = shalt.err (!%p442_p4)
}
  0xf0   :  { %s446_s13 = scalar_lea.hbm %s593_s3, 2048 }
  0xf1   :  { %p447_p5 = scmp.ne.s32.totalorder %s593_s3, %s446_s13  ;;  %p450_p6 = scmp.lt.u32.totalorder %s446_s13, %s593_s3 }
  0xf3   :  { %p452_p7 = pnand %p450_p6, %p447_p5 }
  0xf5   :  { %455 = shalt.err (!%p452_p7)
}
  0xf6   :  { %s459_s18 = smov 128   ;;  %s460_s19 = smov 8  }
  0xf7   :  { %334 = dma.vmem_to_hbm [thread:$0]  %s329_s8, 2048, %s593_s3, [#allocation3], %s459_s18, %s459_s18, %s460_s19  }
  0xf8   :  { %456 = dma.done.wait [#allocation3], 2048  }
  0xf9   :  { %457 = vsyncadd [#allocation3], 4294965248 }
  0xfa   :  { %338 = vsyncpa [#allocation3], 1 }

</bundles_post_ra>
